<compile_context>
chip_gen: v5e
topology: v5e:2x2
jax: 0.10.0
libtpu: 0.0.40
codegen_flags: <defaults>
</compile_context>

<pallas_src>
import jax
import jax.numpy as jnp
from jax.experimental import pallas as pl
from jax.experimental.pallas import tpu as pltpu


_CONV_LANE_TILE = 2048   # multiple of 128 (and of 512, for v5e store alignment)
_FC_BATCH_TILE = 2048    # multiple of 8


def _tile(n, cap):
    """Full extent if one step suffices, else a fixed cap with a cdiv grid."""
    return n if n <= cap else cap


# ----------------------------------------------------------------------------
# Pallas kernels
# ----------------------------------------------------------------------------
def _conv_mm_kernel(w_ref, p_ref, b_ref, o_ref):
    # w: (OC, K), p: (K, TN), b: (OC, 1) -> o: (OC, TN); lane dim = batch*space.
    acc = jnp.dot(w_ref[...], p_ref[...], preferred_element_type=jnp.float32)
    o_ref[...] = (acc + b_ref[...]).astype(o_ref.dtype)


def conv_layer(w_mat, b_col, patches):
    """Folded conv(+pool) as one batched matmul: (OC, K) @ (K, B*S)."""
    OC, K = w_mat.shape
    N = patches.shape[1]
    tn = _tile(N, _CONV_LANE_TILE)
    return pl.pallas_call(
        _conv_mm_kernel,
        out_shape=jax.ShapeDtypeStruct((OC, N), jnp.float32),
        grid=(pl.cdiv(N, tn),),
        in_specs=[
            pl.BlockSpec((OC, K), lambda i: (0, 0)),   # weights, resident
            pl.BlockSpec((K, tn), lambda i: (0, i)),   # lane tile of patches
            pl.BlockSpec((OC, 1), lambda i: (0, 0)),   # bias column
        ],
        out_specs=pl.BlockSpec((OC, tn), lambda i: (0, i)),
        compiler_params=pltpu.CompilerParams(
            dimension_semantics=("parallel",),
            vmem_limit_bytes=32 * 1024 * 1024,
        ),
    )(w_mat, patches, b_col)


def _fc_stack_kernel(x_ref, w1_ref, b1_ref, w2_ref, b2_ref, w3_ref, b3_ref,
                     o_ref):
    # Fused fc1 -> ReLU -> fc2 -> ReLU -> fc3; intermediates stay on-chip.
    h = jnp.dot(x_ref[...], w1_ref[...], preferred_element_type=jnp.float32)
    h = jnp.maximum(h + b1_ref[...], 0.0)
    h = jnp.dot(h, w2_ref[...], preferred_element_type=jnp.float32)
    h = jnp.maximum(h + b2_ref[...], 0.0)
    h = jnp.dot(h, w3_ref[...], preferred_element_type=jnp.float32)
    o_ref[...] = (h + b3_ref[...]).astype(o_ref.dtype)


def fc_stack(x, w1, b1, w2, b2, w3, b3):
    """x: (B, 400) -> logits (B, 10); one pallas_call, tiled over batch."""
    B, K = x.shape
    N1, N2, N3 = w1.shape[1], w2.shape[1], w3.shape[1]
    tb = _tile(B, _FC_BATCH_TILE)
    return pl.pallas_call(
        _fc_stack_kernel,
        out_shape=jax.ShapeDtypeStruct((B, N3), jnp.float32),
        grid=(pl.cdiv(B, tb),),
        in_specs=[
            pl.BlockSpec((tb, K), lambda i: (i, 0)),
            pl.BlockSpec((K, N1), lambda i: (0, 0)),
            pl.BlockSpec((1, N1), lambda i: (0, 0)),
            pl.BlockSpec((N1, N2), lambda i: (0, 0)),
            pl.BlockSpec((1, N2), lambda i: (0, 0)),
            pl.BlockSpec((N2, N3), lambda i: (0, 0)),
            pl.BlockSpec((1, N3), lambda i: (0, 0)),
        ],
        out_specs=pl.BlockSpec((tb, N3), lambda i: (i, 0)),
        compiler_params=pltpu.CompilerParams(
            dimension_semantics=("parallel",),
            vmem_limit_bytes=32 * 1024 * 1024,
        ),
    )(x, w1, b1, w2, b2, w3, b3)


# ----------------------------------------------------------------------------
# One-time parameter preparation (hoisted out of the forward path)
# ----------------------------------------------------------------------------
def fold_pool_into_conv(w):
    """conv(kxk, s1) followed by avgpool(2x2, s2) == conv((k+1)x(k+1), s2)
    with this kernel (exact algebraic identity; bias is unchanged)."""
    OC, C, k, _ = w.shape
    we = jnp.zeros((OC, C, k + 1, k + 1), jnp.float32)
    for a in (0, 1):
        for b in (0, 1):
            we = we.at[:, :, a:a + k, b:b + k].add(w.astype(jnp.float32))
    return we * 0.25


def _pad_to(a, shape):
    """Zero-pad trailing edges of `a` up to `shape` (exactness-preserving)."""
    return jnp.pad(a, [(0, t - s) for s, t in zip(a.shape, shape)])


def prepare_params(params):
    w1e = fold_pool_into_conv(params["conv1_w"])   # (6, 3, 6, 6)
    w2e = fold_pool_into_conv(params["conv2_w"])   # (16, 6, 6, 6)
    # FC weights: transpose + zero-pad hidden dims 120->128 / 84->128 so the
    # in-kernel hidden matmuls are lane-dense.  Padded rows/cols are zero, so
    # results are bit-identical to the unpadded math.
    f32 = jnp.float32
    fc1_wt = params["fc1_w"].T.astype(f32)         # (400, 120)
    fc2_wt = params["fc2_w"].T.astype(f32)         # (120, 84)
    fc3_wt = params["fc3_w"].T.astype(f32)         # (84, 10)
    N1P, N2P = 128, 128
    return {
        "conv1_wm": w1e.reshape(6, -1),                               # (6, 108)
        "conv1_bc": params["conv1_b"].reshape(6, 1).astype(f32),
        "conv2_wm": w2e.reshape(16, -1),                              # (16, 216)
        "conv2_bc": params["conv2_b"].reshape(16, 1).astype(f32),
        "fc1_wp": _pad_to(fc1_wt, (400, N1P)),                        # (400, 128)
        "fc1_bp": _pad_to(params["fc1_b"].reshape(1, -1).astype(f32), (1, N1P)),
        "fc2_wp": _pad_to(fc2_wt, (N1P, N2P)),                        # (128, 128)
        "fc2_bp": _pad_to(params["fc2_b"].reshape(1, -1).astype(f32), (1, N2P)),
        "fc3_wp": _pad_to(fc3_wt, (N2P, 10)),                         # (128, 10)
        "fc3_bp": params["fc3_b"].reshape(1, -1).astype(f32),         # (1, 10)
    }


# ----------------------------------------------------------------------------
# Forward pass
# ----------------------------------------------------------------------------
def extract_patches_cm(xc, k, stride):
    """Channel-major im2col by pure data movement (strided slices + stack).

    xc: (C, B, H, W)  ->  (C*k*k, B*OH*OW); K ordering is (c, i, j)-major so it
    matches the (OC, C, k, k) weight flatten.  No MXU involvement.
    """
    C, B, H, W = xc.shape
    OH = (H - k) // stride + 1
    OW = (W - k) // stride + 1
    slices = [xc[:, :, i:i + stride * (OH - 1) + 1:stride,
                       j:j + stride * (OW - 1) + 1:stride]
              for i in range(k) for j in range(k)]          # each (C, B, OH, OW)
    p = jnp.stack(slices, axis=1)                            # (C, k*k, B, OH, OW)
    return p.reshape(C * k * k, B * OH * OW)


def lenet5_forward(x, prep):
    B = x.shape[0]
    xc = jnp.transpose(x, (1, 0, 2, 3))                       # (3, B, 32, 32)
    # Layer 1: conv1(5x5)+bias+avgpool2x2 folded -> one (6,108)@(108,B*196).
    p1 = extract_patches_cm(xc, 6, 2)                         # (108, B*196)
    y1 = conv_layer(prep["conv1_wm"], prep["conv1_bc"], p1)   # (6, B*196)
    # Layer 2: conv2(5x5)+bias+avgpool2x2 folded -> one (16,216)@(216,B*25).
    p2 = extract_patches_cm(y1.reshape(6, B, 14, 14), 6, 2)   # (216, B*25)
    y2 = conv_layer(prep["conv2_wm"], prep["conv2_bc"], p2)   # (16, B*25)
    # FC head; per-image (16, 5*5) row-major flatten == torch.nn.Flatten(NCHW).
    feat = y2.reshape(16, B, 25).transpose(1, 0, 2).reshape(B, 400)
    return fc_stack(feat, prep["fc1_wp"], prep["fc1_bp"],
                    prep["fc2_wp"], prep["fc2_bp"],
                    prep["fc3_wp"], prep["fc3_bp"])           # (B, 10)


# ----------------------------------------------------------------------------
# Init + pure-JAX reference
# ----------------------------------------------------------------------------
def init_params(key):
    ks = jax.random.split(key, 10)
    def w(k, shape, fan_in):
        return jax.random.normal(k, shape, jnp.float32) / jnp.sqrt(fan_in)
    return {
        "conv1_w": w(ks[0], (6, 3, 5, 5), 3 * 5 * 5),
        "conv1_b": w(ks[1], (6,), 3 * 5 * 5),
        "conv2_w": w(ks[2], (16, 6, 5, 5), 6 * 5 * 5),
        "conv2_b": w(ks[3], (16,), 6 * 5 * 5),
        "fc1_w": w(ks[4], (120, 400), 400),
        "fc1_b": w(ks[5], (120,), 400),
        "fc2_w": w(ks[6], (84, 120), 120),
        "fc2_b": w(ks[7], (84,), 120),
        "fc3_w": w(ks[8], (10, 84), 84),
        "fc3_b": w(ks[9], (10,), 84),
    }


def _reference_forward(x, p):
    """Pure-JAX reference matching the PyTorch module (no Pallas)."""
    dn = ("NCHW", "OIHW", "NCHW")
    hp = jax.lax.Precision.HIGHEST
    y = jax.lax.conv_general_dilated(x, p["conv1_w"], (1, 1), "VALID",
                                     dimension_numbers=dn, precision=hp)
    y = y + p["conv1_b"][None, :, None, None]
    y = jax.lax.reduce_window(y, 0.0, jax.lax.add, (1, 1, 2, 2), (1, 1, 2, 2),
                              "VALID") * 0.25
    y = jax.lax.conv_general_dilated(y, p["conv2_w"], (1, 1), "VALID",
                                     dimension_numbers=dn, precision=hp)
    y = y + p["conv2_b"][None, :, None, None]
    y = jax.lax.reduce_window(y, 0.0, jax.lax.add, (1, 1, 2, 2), (1, 1, 2, 2),
                              "VALID") * 0.25
    y = y.reshape(y.shape[0], -1)
    y = jnp.maximum(jnp.dot(y, p["fc1_w"].T, precision=hp) + p["fc1_b"], 0.0)
    y = jnp.maximum(jnp.dot(y, p["fc2_w"].T, precision=hp) + p["fc2_b"], 0.0)
    y = jnp.dot(y, p["fc3_w"].T, precision=hp) + p["fc3_b"]
    return y


if __name__ == "__main__":
    key = jax.random.PRNGKey(0)
    k_x, k_p = jax.random.split(key)
    # LeNet-5's Linear(16*5*5, 120) fixes the spatial size: CIFAR10 3x32x32.
    B = 2
    x = jax.random.normal(k_x, (B, 3, 32, 32), jnp.float32)
    params = init_params(k_p)
    prep = prepare_params(params)          # one-time weight prep (hoisted)

    fwd = jax.jit(lenet5_forward)
    out = jax.block_until_ready(fwd(x, prep))
    assert out.shape == (B, 10), out.shape

    ref = jax.block_until_ready(_reference_forward(x, params))
    max_err = float(jnp.max(jnp.abs(out - ref)))
    assert jnp.allclose(out, ref, atol=2e-3, rtol=2e-3), max_err

    print("KERNEL_OK")
</pallas_src>

<mosaic_0001>
module attributes {stable_mosaic.version = 11 : i64} {
  func.func @_conv_mm_kernel(%arg0: i32, %arg1: memref<6x108xf32, #tpu.memory_space<vmem>>, %arg2: memref<108x392xf32, #tpu.memory_space<vmem>>, %arg3: memref<6x1xf32, #tpu.memory_space<vmem>>, %arg4: memref<6x392xf32, #tpu.memory_space<vmem>>) attributes {dimension_semantics = [#tpu.dimension_semantics<parallel>], iteration_bounds = array<i64: 1>, scalar_prefetch = 0 : i64, scratch_operands = 0 : i64, tpu.core_type = #tpu.core_type<tc>, window_params = [{pipeline_mode = #tpu.pipeline_mode<synchronous>, transform_indices = @transform_0, window_bounds = array<i64: 6, 108>}, {transform_indices = @transform_1, window_bounds = array<i64: 108, 392>}, {pipeline_mode = #tpu.pipeline_mode<synchronous>, transform_indices = @transform_2, window_bounds = array<i64: 6, 1>}, {transform_indices = @transform_3, window_bounds = array<i64: 6, 392>}]} {
    %c0 = arith.constant 0 : index
    %c0_0 = arith.constant 0 : index
    %0 = vector.load %arg1[%c0, %c0_0] : memref<6x108xf32, #tpu.memory_space<vmem>>, vector<6x108xf32>
    %c0_1 = arith.constant 0 : index
    %c0_2 = arith.constant 0 : index
    %1 = vector.load %arg2[%c0_1, %c0_2] : memref<108x392xf32, #tpu.memory_space<vmem>>, vector<108x392xf32>
    %cst = arith.constant dense<0.000000e+00> : vector<6x392xf32>
    %2 = tpu.matmul %0, %1, %cst {dimension_numbers = #tpu.dot_dimension_numbers<[1], [0], [0], [1], [0, 0, 1, 1], [], []>} : vector<6x108xf32>, vector<108x392xf32>, vector<6x392xf32> -> vector<6x392xf32>
    %c0_3 = arith.constant 0 : index
    %c0_4 = arith.constant 0 : index
    %3 = vector.load %arg3[%c0_3, %c0_4] : memref<6x1xf32, #tpu.memory_space<vmem>>, vector<6x1xf32>
    %4 = vector.broadcast %3 : vector<6x1xf32> to vector<6x392xf32>
    %5 = arith.addf %2, %4 : vector<6x392xf32>
    %c0_5 = arith.constant 0 : index
    %c0_6 = arith.constant 0 : index
    %6 = vector.load %arg4[%c0_5, %c0_6] : memref<6x392xf32, #tpu.memory_space<vmem>>, vector<6x392xf32>
    tpu.vector_store %arg4[%c0_5, %c0_6], %5 {strides = array<i32>} : memref<6x392xf32, #tpu.memory_space<vmem>>, vector<6x392xf32>,
    return
  }
  func.func @transform_0(%arg0: i32) -> (i32, i32) {
    %c0_i32 = arith.constant 0 : i32
    %c0_i32_0 = arith.constant 0 : i32
    %c0_i32_1 = arith.constant 0 : i32
    return %c0_i32, %c0_i32_0 : i32, i32
  }
  func.func @transform_1(%arg0: i32) -> (i32, i32) {
    %c0_i32 = arith.constant 0 : i32
    %c0_i32_0 = arith.constant 0 : i32
    return %c0_i32, %arg0 : i32, i32
  }
  func.func @transform_2(%arg0: i32) -> (i32, i32) {
    %c0_i32 = arith.constant 0 : i32
    %c0_i32_0 = arith.constant 0 : i32
    %c0_i32_1 = arith.constant 0 : i32
    return %c0_i32, %c0_i32_0 : i32, i32
  }
  func.func @transform_3(%arg0: i32) -> (i32, i32) {
    %c0_i32 = arith.constant 0 : i32
    %c0_i32_0 = arith.constant 0 : i32
    return %c0_i32, %arg0 : i32, i32
  }
}

module attributes {stable_mosaic.version = 11 : i64} {
  func.func @_conv_mm_kernel(%arg0: i32, %arg1: memref<16x216xf32, #tpu.memory_space<vmem>>, %arg2: memref<216x50xf32, #tpu.memory_space<vmem>>, %arg3: memref<16x1xf32, #tpu.memory_space<vmem>>, %arg4: memref<16x50xf32, #tpu.memory_space<vmem>>) attributes {dimension_semantics = [#tpu.dimension_semantics<parallel>], iteration_bounds = array<i64: 1>, scalar_prefetch = 0 : i64, scratch_operands = 0 : i64, tpu.core_type = #tpu.core_type<tc>, window_params = [{pipeline_mode = #tpu.pipeline_mode<synchronous>, transform_indices = @transform_0, window_bounds = array<i64: 16, 216>}, {transform_indices = @transform_1, window_bounds = array<i64: 216, 50>}, {pipeline_mode = #tpu.pipeline_mode<synchronous>, transform_indices = @transform_2, window_bounds = array<i64: 16, 1>}, {transform_indices = @transform_3, window_bounds = array<i64: 16, 50>}]} {
    %c0 = arith.constant 0 : index
    %c0_0 = arith.constant 0 : index
    %0 = vector.load %arg1[%c0, %c0_0] : memref<16x216xf32, #tpu.memory_space<vmem>>, vector<16x216xf32>
    %c0_1 = arith.constant 0 : index
    %c0_2 = arith.constant 0 : index
    %1 = vector.load %arg2[%c0_1, %c0_2] : memref<216x50xf32, #tpu.memory_space<vmem>>, vector<216x50xf32>
    %cst = arith.constant dense<0.000000e+00> : vector<16x50xf32>
    %2 = tpu.matmul %0, %1, %cst {dimension_numbers = #tpu.dot_dimension_numbers<[1], [0], [0], [1], [0, 0, 1, 1], [], []>} : vector<16x216xf32>, vector<216x50xf32>, vector<16x50xf32> -> vector<16x50xf32>
    %c0_3 = arith.constant 0 : index
    %c0_4 = arith.constant 0 : index
    %3 = vector.load %arg3[%c0_3, %c0_4] : memref<16x1xf32, #tpu.memory_space<vmem>>, vector<16x1xf32>
    %4 = vector.broadcast %3 : vector<16x1xf32> to vector<16x50xf32>
    %5 = arith.addf %2, %4 : vector<16x50xf32>
    %c0_5 = arith.constant 0 : index
    %c0_6 = arith.constant 0 : index
    %6 = vector.load %arg4[%c0_5, %c0_6] : memref<16x50xf32, #tpu.memory_space<vmem>>, vector<16x50xf32>
    tpu.vector_store %arg4[%c0_5, %c0_6], %5 {strides = array<i32>} : memref<16x50xf32, #tpu.memory_space<vmem>>, vector<16x50xf32>,
    return
  }
  func.func @transform_0(%arg0: i32) -> (i32, i32) {
    %c0_i32 = arith.constant 0 : i32
    %c0_i32_0 = arith.constant 0 : i32
    %c0_i32_1 = arith.constant 0 : i32
    return %c0_i32, %c0_i32_0 : i32, i32
  }
  func.func @transform_1(%arg0: i32) -> (i32, i32) {
    %c0_i32 = arith.constant 0 : i32
    %c0_i32_0 = arith.constant 0 : i32
    return %c0_i32, %arg0 : i32, i32
  }
  func.func @transform_2(%arg0: i32) -> (i32, i32) {
    %c0_i32 = arith.constant 0 : i32
    %c0_i32_0 = arith.constant 0 : i32
    %c0_i32_1 = arith.constant 0 : i32
    return %c0_i32, %c0_i32_0 : i32, i32
  }
  func.func @transform_3(%arg0: i32) -> (i32, i32) {
    %c0_i32 = arith.constant 0 : i32
    %c0_i32_0 = arith.constant 0 : i32
    return %c0_i32, %arg0 : i32, i32
  }
}

module attributes {stable_mosaic.version = 11 : i64} {
  func.func @_fc_stack_kernel(%arg0: i32, %arg1: memref<2x400xf32, #tpu.memory_space<vmem>>, %arg2: memref<400x128xf32, #tpu.memory_space<vmem>>, %arg3: memref<1x128xf32, #tpu.memory_space<vmem>>, %arg4: memref<128x128xf32, #tpu.memory_space<vmem>>, %arg5: memref<1x128xf32, #tpu.memory_space<vmem>>, %arg6: memref<128x10xf32, #tpu.memory_space<vmem>>, %arg7: memref<1x10xf32, #tpu.memory_space<vmem>>, %arg8: memref<2x10xf32, #tpu.memory_space<vmem>>) attributes {dimension_semantics = [#tpu.dimension_semantics<parallel>], iteration_bounds = array<i64: 1>, scalar_prefetch = 0 : i64, scratch_operands = 0 : i64, tpu.core_type = #tpu.core_type<tc>, window_params = [{transform_indices = @transform_0, window_bounds = array<i64: 2, 400>}, {pipeline_mode = #tpu.pipeline_mode<synchronous>, transform_indices = @transform_1, window_bounds = array<i64: 400, 128>}, {pipeline_mode = #tpu.pipeline_mode<synchronous>, transform_indices = @transform_2, window_bounds = array<i64: 1, 128>}, {pipeline_mode = #tpu.pipeline_mode<synchronous>, transform_indices = @transform_3, window_bounds = array<i64: 128, 128>}, {pipeline_mode = #tpu.pipeline_mode<synchronous>, transform_indices = @transform_4, window_bounds = array<i64: 1, 128>}, {pipeline_mode = #tpu.pipeline_mode<synchronous>, transform_indices = @transform_5, window_bounds = array<i64: 128, 10>}, {pipeline_mode = #tpu.pipeline_mode<synchronous>, transform_indices = @transform_6, window_bounds = array<i64: 1, 10>}, {transform_indices = @transform_7, window_bounds = array<i64: 2, 10>}]} {
    %c0 = arith.constant 0 : index
    %c0_0 = arith.constant 0 : index
    %0 = vector.load %arg1[%c0, %c0_0] : memref<2x400xf32, #tpu.memory_space<vmem>>, vector<2x400xf32>
    %c0_1 = arith.constant 0 : index
    %c0_2 = arith.constant 0 : index
    %1 = vector.load %arg2[%c0_1, %c0_2] : memref<400x128xf32, #tpu.memory_space<vmem>>, vector<400x128xf32>
    %cst = arith.constant dense<0.000000e+00> : vector<2x128xf32>
    %2 = tpu.matmul %0, %1, %cst {dimension_numbers = #tpu.dot_dimension_numbers<[1], [0], [0], [1], [0, 0, 1, 1], [], []>} : vector<2x400xf32>, vector<400x128xf32>, vector<2x128xf32> -> vector<2x128xf32>
    %c0_3 = arith.constant 0 : index
    %c0_4 = arith.constant 0 : index
    %3 = vector.load %arg3[%c0_3, %c0_4] : memref<1x128xf32, #tpu.memory_space<vmem>>, vector<1x128xf32>
    %4 = vector.broadcast %3 : vector<1x128xf32> to vector<2x128xf32>
    %5 = arith.addf %2, %4 : vector<2x128xf32>
    %cst_5 = arith.constant 0.000000e+00 : f32
    %6 = vector.broadcast %cst_5 : f32 to vector<2x128xf32>
    %7 = arith.maximumf %5, %6 : vector<2x128xf32>
    %c0_6 = arith.constant 0 : index
    %c0_7 = arith.constant 0 : index
    %8 = vector.load %arg4[%c0_6, %c0_7] : memref<128x128xf32, #tpu.memory_space<vmem>>, vector<128x128xf32>
    %cst_8 = arith.constant dense<0.000000e+00> : vector<2x128xf32>
    %9 = tpu.matmul %7, %8, %cst_8 {dimension_numbers = #tpu.dot_dimension_numbers<[1], [0], [0], [1], [0, 0, 1, 1], [], []>} : vector<2x128xf32>, vector<128x128xf32>, vector<2x128xf32> -> vector<2x128xf32>
    %c0_9 = arith.constant 0 : index
    %c0_10 = arith.constant 0 : index
    %10 = vector.load %arg5[%c0_9, %c0_10] : memref<1x128xf32, #tpu.memory_space<vmem>>, vector<1x128xf32>
    %11 = vector.broadcast %10 : vector<1x128xf32> to vector<2x128xf32>
    %12 = arith.addf %9, %11 : vector<2x128xf32>
    %cst_11 = arith.constant 0.000000e+00 : f32
    %13 = vector.broadcast %cst_11 : f32 to vector<2x128xf32>
    %14 = arith.maximumf %12, %13 : vector<2x128xf32>
    %c0_12 = arith.constant 0 : index
    %c0_13 = arith.constant 0 : index
    %15 = vector.load %arg6[%c0_12, %c0_13] : memref<128x10xf32, #tpu.memory_space<vmem>>, vector<128x10xf32>
    %cst_14 = arith.constant dense<0.000000e+00> : vector<2x10xf32>
    %16 = tpu.matmul %14, %15, %cst_14 {dimension_numbers = #tpu.dot_dimension_numbers<[1], [0], [0], [1], [0, 0, 1, 1], [], []>} : vector<2x128xf32>, vector<128x10xf32>, vector<2x10xf32> -> vector<2x10xf32>
    %c0_15 = arith.constant 0 : index
    %c0_16 = arith.constant 0 : index
    %17 = vector.load %arg7[%c0_15, %c0_16] : memref<1x10xf32, #tpu.memory_space<vmem>>, vector<1x10xf32>
    %18 = vector.broadcast %17 : vector<1x10xf32> to vector<2x10xf32>
    %19 = arith.addf %16, %18 : vector<2x10xf32>
    %c0_17 = arith.constant 0 : index
    %c0_18 = arith.constant 0 : index
    %20 = vector.load %arg8[%c0_17, %c0_18] : memref<2x10xf32, #tpu.memory_space<vmem>>, vector<2x10xf32>
    tpu.vector_store %arg8[%c0_17, %c0_18], %19 {strides = array<i32>} : memref<2x10xf32, #tpu.memory_space<vmem>>, vector<2x10xf32>,
    return
  }
  func.func @transform_0(%arg0: i32) -> (i32, i32) {
    %c0_i32 = arith.constant 0 : i32
    %c0_i32_0 = arith.constant 0 : i32
    return %arg0, %c0_i32 : i32, i32
  }
  func.func @transform_1(%arg0: i32) -> (i32, i32) {
    %c0_i32 = arith.constant 0 : i32
    %c0_i32_0 = arith.constant 0 : i32
    %c0_i32_1 = arith.constant 0 : i32
    return %c0_i32, %c0_i32_0 : i32, i32
  }
  func.func @transform_2(%arg0: i32) -> (i32, i32) {
    %c0_i32 = arith.constant 0 : i32
    %c0_i32_0 = arith.constant 0 : i32
    %c0_i32_1 = arith.constant 0 : i32
    return %c0_i32, %c0_i32_0 : i32, i32
  }
  func.func @transform_3(%arg0: i32) -> (i32, i32) {
    %c0_i32 = arith.constant 0 : i32
    %c0_i32_0 = arith.constant 0 : i32
    %c0_i32_1 = arith.constant 0 : i32
    return %c0_i32, %c0_i32_0 : i32, i32
  }
  func.func @transform_4(%arg0: i32) -> (i32, i32) {
    %c0_i32 = arith.constant 0 : i32
    %c0_i32_0 = arith.constant 0 : i32
    %c0_i32_1 = arith.constant 0 : i32
    return %c0_i32, %c0_i32_0 : i32, i32
  }
  func.func @transform_5(%arg0: i32) -> (i32, i32) {
    %c0_i32 = arith.constant 0 : i32
    %c0_i32_0 = arith.constant 0 : i32
    %c0_i32_1 = arith.constant 0 : i32
    return %c0_i32, %c0_i32_0 : i32, i32
  }
  func.func @transform_6(%arg0: i32) -> (i32, i32) {
    %c0_i32 = arith.constant 0 : i32
    %c0_i32_0 = arith.constant 0 : i32
    %c0_i32_1 = arith.constant 0 : i32
    return %c0_i32, %c0_i32_0 : i32, i32
  }
  func.func @transform_7(%arg0: i32) -> (i32, i32) {
    %c0_i32 = arith.constant 0 : i32
    %c0_i32_0 = arith.constant 0 : i32
    return %arg0, %c0_i32 : i32, i32
  }
}

</mosaic_0001>

<bundles_post_ra>
// kernel: lenet5_forward.3
= control target key start
LH: loop header
LB: loop body
LE: loop exit
PB: predicated region body
PF: predicated region fallthrough
CT: control target
= control target key end

     0   :  { %vm81_vm0 = vcmask 1043456   ;;  %v193_v8 = vmov 0   ;;  %vm77_vm1 = vcmask 883712   ;;  %vm177_vm2 = vcmask 62464   ;;  %s408_s1 = inlined_call_operand.vmem [shape: f32[108,392], index: 1, kind: input, shape index: {}]   ;;  %s409_s0 = inlined_call_operand.vmem [shape: f32[6,108], index: 0, kind: input, shape index: {}]   ;;  %s410_s2 = inlined_call_operand.vmem [shape: f32[6,1], index: 2, kind: input, shape index: {}]   ;;  %s411_s3 = inlined_call_operand.vmem [shape: f32[6,392], index: 3, kind: output, shape index: {}]  }
   0x1   :  { %v69_v0 = vld [vmem:[%s408_s1 + $0x1b0] sm:$0xf]  ;;  %v70_v1 = vld [vmem:[%s408_s1 + $0x1b8] sm:$0xf]  ;;  %v67_v6 = vld [vmem:[%s408_s1 + $0x1a0] sm:$0xf]  ;;  %192 = vset.pattern.permute.xlu0 %v193_v8 }
   0x2   :  { %v65_v2 = vld [vmem:[%s408_s1 + $0x190] sm:$0xff]  ;;  %187 = vmatpush.msk.msra.mxu2 %vm81_vm0, %v69_v0  ;;  %189 = vmatpush.msk.msra.mxu3 %vm81_vm0, %v70_v1  ;;  %v66_v3 = vld [vmem:[%s408_s1 + $0x198] sm:$0xff]  ;;  %v68_v7 = vld [vmem:[%s408_s1 + $0x1a8] sm:$0xf] }
   0x3   :  { %v61_v4 = vld [vmem:[%s408_s1 + $0x170] sm:$0xff]  ;;  %v62_v5 = vld [vmem:[%s408_s1 + $0x178] sm:$0xff]  ;;  %v63_v9 = vld [vmem:[%s408_s1 + $0x180] sm:$0xff]  ;;  %183 = vmatpush.msk.msra.mxu0 %vm81_vm0, %v67_v6  ;;  %185 = vmatpush.msk.msra.mxu1 %vm81_vm0, %v68_v7 }
   0x4   :  { %137 = vmatpush.msra.mxu2 %v65_v2  ;;  %157 = vmatpush.msra.mxu3 %v66_v3  ;;  %v64_v10 = vld [vmem:[%s408_s1 + $0x188] sm:$0xff]  ;;  %v57_v11 = vld [vmem:[%s408_s1 + $0x150] sm:$0xff]  ;;  %v58_v12 = vld [vmem:[%s408_s1 + $0x158] sm:$0xff] }
   0x5   :  { %v59_v13 = vld [vmem:[%s408_s1 + $0x160] sm:$0xff]  ;;  %v60_v14 = vld [vmem:[%s408_s1 + $0x168] sm:$0xff]  ;;  %97 = vmatpush.msra.mxu0 %v63_v9  ;;  %117 = vmatpush.msra.mxu1 %v64_v10  ;;  %v53_v15 = vld [vmem:[%s408_s1 + $0x130] sm:$0xff] }
   0x6   :  { %138 = vmatpush.msra.mxu2 %v61_v4  ;;  %158 = vmatpush.msra.mxu3 %v62_v5  ;;  %v54_v16 = vld [vmem:[%s408_s1 + $0x138] sm:$0xff]  ;;  %v55_v17 = vld [vmem:[%s408_s1 + $0x140] sm:$0xff]  ;;  %v56_v18 = vld [vmem:[%s408_s1 + $0x148] sm:$0xff] }
   0x7   :  { %98 = vmatpush.msra.mxu0 %v59_v13  ;;  %118 = vmatpush.msra.mxu1 %v60_v14  ;;  %v49_v19 = vld [vmem:[%s408_s1 + $0x110] sm:$0xff]  ;;  %v50_v20 = vld [vmem:[%s408_s1 + $0x118] sm:$0xff]  ;;  %v51_v21 = vld [vmem:[%s408_s1 + $0x120] sm:$0xff] }
   0x8   :  { %139 = vmatpush.msra.mxu2 %v57_v11  ;;  %159 = vmatpush.msra.mxu3 %v58_v12  ;;  %v52_v22 = vld [vmem:[%s408_s1 + $0x128] sm:$0xff]  ;;  %v45_v23 = vld [vmem:[%s408_s1 + $0xf0] sm:$0xff]  ;;  %v46_v24 = vld [vmem:[%s408_s1 + $0xf8] sm:$0xff] }
   0x9   :  { %99 = vmatpush.msra.mxu0 %v55_v17  ;;  %119 = vmatpush.msra.mxu1 %v56_v18  ;;  %v47_v25 = vld [vmem:[%s408_s1 + $0x100] sm:$0xff]  ;;  %v48_v26 = vld [vmem:[%s408_s1 + $0x108] sm:$0xff]  ;;  %v41_v27 = vld [vmem:[%s408_s1 + $0xd0] sm:$0xff] }
   0xa   :  { %140 = vmatpush.msra.mxu2 %v53_v15  ;;  %160 = vmatpush.msra.mxu3 %v54_v16  ;;  %v42_v28 = vld [vmem:[%s408_s1 + $0xd8] sm:$0xff]  ;;  %v43_v29 = vld [vmem:[%s408_s1 + $0xe0] sm:$0xff]  ;;  %v44_v30 = vld [vmem:[%s408_s1 + $0xe8] sm:$0xff] }
   0xb   :  { %100 = vmatpush.msra.mxu0 %v51_v21  ;;  %120 = vmatpush.msra.mxu1 %v52_v22  ;;  %v37_v31 = vld [vmem:[%s408_s1 + $0xb0] sm:$0xff]  ;;  %v38_v32 = vld [vmem:[%s408_s1 + $0xb8] sm:$0xff]  ;;  %v39_v33 = vld [vmem:[%s408_s1 + $0xc0] sm:$0xff] }
   0xc   :  { %141 = vmatpush.msra.mxu2 %v49_v19  ;;  %161 = vmatpush.msra.mxu3 %v50_v20  ;;  %v40_v34 = vld [vmem:[%s408_s1 + $0xc8] sm:$0xff]  ;;  %v33_v35 = vld [vmem:[%s408_s1 + $0x90] sm:$0xff]  ;;  %v34_v36 = vld [vmem:[%s408_s1 + $0x98] sm:$0xff] }
   0xd   :  { %101 = vmatpush.msra.mxu0 %v47_v25  ;;  %121 = vmatpush.msra.mxu1 %v48_v26  ;;  %v35_v37 = vld [vmem:[%s408_s1 + $0xa0] sm:$0xff]  ;;  %v36_v38 = vld [vmem:[%s408_s1 + $0xa8] sm:$0xff]  ;;  %v29_v39 = vld [vmem:[%s408_s1 + $0x70] sm:$0xff] }
   0xe   :  { %142 = vmatpush.msra.mxu2 %v45_v23  ;;  %162 = vmatpush.msra.mxu3 %v46_v24  ;;  %v30_v40 = vld [vmem:[%s408_s1 + $0x78] sm:$0xff]  ;;  %v31_v41 = vld [vmem:[%s408_s1 + $0x80] sm:$0xff]  ;;  %v32_v42 = vld [vmem:[%s408_s1 + $0x88] sm:$0xff] }
   0xf   :  { %102 = vmatpush.msra.mxu0 %v43_v29  ;;  %122 = vmatpush.msra.mxu1 %v44_v30  ;;  %v25_v43 = vld [vmem:[%s408_s1 + $0x50] sm:$0xff]  ;;  %v26_v44 = vld [vmem:[%s408_s1 + $0x58] sm:$0xff]  ;;  %v27_v45 = vld [vmem:[%s408_s1 + $0x60] sm:$0xff] }
  0x10   :  { %143 = vmatpush.msra.mxu2 %v41_v27  ;;  %163 = vmatpush.msra.mxu3 %v42_v28  ;;  %v28_v46 = vld [vmem:[%s408_s1 + $0x68] sm:$0xff]  ;;  %v21_v47 = vld [vmem:[%s408_s1 + $0x30] sm:$0xff]  ;;  %v22_v48 = vld [vmem:[%s408_s1 + $0x38] sm:$0xff] }
  0x11   :  { %103 = vmatpush.msra.mxu0 %v39_v33  ;;  %123 = vmatpush.msra.mxu1 %v40_v34  ;;  %v23_v49 = vld [vmem:[%s408_s1 + $0x40] sm:$0xff]  ;;  %v24_v50 = vld [vmem:[%s408_s1 + $0x48] sm:$0xff]  ;;  %v17_v51 = vld [vmem:[%s408_s1 + $0x10] sm:$0xff] }
  0x12   :  { %144 = vmatpush.msra.mxu2 %v37_v31  ;;  %164 = vmatpush.msra.mxu3 %v38_v32  ;;  %v18_v52 = vld [vmem:[%s408_s1 + $0x18] sm:$0xff]  ;;  %v14_v53 = vld [vmem:[%s409_s0] sm:$0x3f]  ;;  %v20_v55 = vld [vmem:[%s408_s1 + $0x28] sm:$0xff] }
  0x13   :  { %104 = vmatpush.msra.mxu0 %v35_v37  ;;  %124 = vmatpush.msra.mxu1 %v36_v38  ;;  %v19_v54 = vld [vmem:[%s408_s1 + $0x20] sm:$0xff]  ;;  %v16_v58 = vld [vmem:[%s408_s1 + $0x8] sm:$0xff] }
  0x14   :  { %145 = vmatpush.msra.mxu2 %v33_v35  ;;  %165 = vmatpush.msra.mxu3 %v34_v36  ;;  %v71_v56 = vld [vmem:[%s410_s2] sm:$0x3f] }
  0x15   :  { %105 = vmatpush.msra.mxu0 %v31_v41  ;;  %125 = vmatpush.msra.mxu1 %v32_v42  ;;  %v15_v57 = vld [vmem:[%s408_s1] sm:$0xff] }
  0x16   :  { %146 = vmatpush.msra.mxu2 %v29_v39  ;;  %166 = vmatpush.msra.mxu3 %v30_v40 }
  0x17   :  { %106 = vmatpush.msra.mxu0 %v27_v45  ;;  %126 = vmatpush.msra.mxu1 %v28_v46 }
  0x18   :  { %147 = vmatpush.msra.mxu2 %v25_v43  ;;  %167 = vmatpush.msra.mxu3 %v26_v44 }
  0x19   :  { %107 = vmatpush.msra.mxu0 %v23_v49  ;;  %127 = vmatpush.msra.mxu1 %v24_v50 }
  0x1a   :  { %148 = vmatpush.msra.mxu2 %v21_v47  ;;  %168 = vmatpush.msra.mxu3 %v22_v48 }
  0x1b   :  { %108 = vmatpush.msra.mxu0 %v19_v54  ;;  %128 = vmatpush.msra.mxu1 %v20_v55 }
  0x1c   :  { %149 = vmatpush.msra.mxu2 %v17_v51  ;;  %169 = vmatpush.msra.mxu3 %v18_v52 }
  0x1d   :  { %188 = vmatmul.msk.f32.vlgmr.msra.gmra.mxu2 %vm77_vm1, %v14_v53  ;;  %190 = vmatmul.msk.f32.vlgmr.msra.gmra.mxu3 %vm77_vm1, %v14_v53 }
  0x1e   :  { %74 = vperm.xlu0 %192, %v71_v56   ;;  %109 = vmatpush.msra.mxu0 %v15_v57 }
  0x1f   :  { %129 = vmatpush.msra.mxu1 %v16_v58  ;;  %184 = vmatmul.msk.f32.vlgmr.msra.gmra.mxu0 %vm77_vm1, %v14_v53 }
  0x20   :  { %186 = vmatmul.msk.f32.vlgmr.msra.gmra.mxu1 %vm77_vm1, %v14_v53 }
  0x90   :  { %v75_v59 = vpop.permute.xlu0 %74 }
  0x9c   :  { %v111_v60 = vpop.f32.mrf.mxu0 }
  0x9d   :  { %v131_v61 = vpop.f32.mrf.mxu1  ;;  %v112_v62 = vadd.f32 %v111_v60, %v75_v59 }
  0x9e   :  { %v132_v63 = vadd.f32 %v131_v61, %v75_v59 }
  0x9f   :  { %174 = vst [vmem:[%s411_s3] sm:$0x3f] %v112_v62 }
  0xa0   :  { %v151_v0 = vpop.f32.mrf.mxu2  ;;  %v171_v1 = vpop.f32.mrf.mxu3  ;;  %175 = vst [vmem:[%s411_s3 + $0x8] sm:$0x3f] %v132_v63 }
  0xa1   :  { %v152_v2 = vadd.f32 %v151_v0, %v75_v59  ;;  %v172_v3 = vadd.f32 %v171_v1, %v75_v59 }
  0xa3   :  { %176 = vst [vmem:[%s411_s3 + $0x10] sm:$0x3f] %v152_v2 }
  0xa4   :  { %178 = vst.msk [vmem:[%s411_s3 + $0x18] sm:$0x3f] %vm177_vm2, %v172_v3 }

// kernel: lenet5_forward.4
= control target key start
LH: loop header
LB: loop body
LE: loop exit
PB: predicated region body
PF: predicated region fallthrough
CT: control target
= control target key end

     0   :  { %v137_v2 = vmov 0   ;;  %vm57_vm0 = vcmask 719872   ;;  %vm110_vm1 = vcmask 408576   ;;  %s265_s1 = inlined_call_operand.vmem [shape: f32[216,50], index: 1, kind: input, shape index: {}]   ;;  %s266_s2 = inlined_call_operand.vmem [shape: f32[16,1], index: 2, kind: input, shape index: {}]   ;;  %s267_s0 = inlined_call_operand.vmem [shape: f32[16,216], index: 0, kind: input, shape index: {}]   ;;  %s268_s3 = inlined_call_operand.vmem [shape: f32[16,50], index: 3, kind: output, shape index: {}]  }
   0x1   :  { %v33_v0 = vld [vmem:[%s265_s1 + $0x78] sm:$0xff]  ;;  %v32_v1 = vld [vmem:[%s265_s1 + $0x70] sm:$0xff]  ;;  %136 = vset.pattern.permute.xlu0 %v137_v2  ;;  %v31_v3 = vld [vmem:[%s265_s1 + $0x68] sm:$0xff] }
   0x2   :  { %64 = vmatpush.msra.mxu0 %v33_v0  ;;  %119 = vmatpush.msra.mxu2 %v33_v0  ;;  %v44_v4 = vld [vmem:[%s265_s1 + $0xd0] sm:$0xff]  ;;  %v43_v5 = vld [vmem:[%s265_s1 + $0xc8] sm:$0xff]  ;;  %v30_v6 = vld [vmem:[%s265_s1 + $0x60] sm:$0xff] }
   0x3   :  { %92 = vmatpush.msra.mxu1 %v44_v4  ;;  %v42_v7 = vld [vmem:[%s265_s1 + $0xc0] sm:$0xff]  ;;  %v29_v8 = vld [vmem:[%s265_s1 + $0x58] sm:$0xff]  ;;  %v28_v10 = vld [vmem:[%s265_s1 + $0x50] sm:$0xff] }
   0x4   :  { %65 = vmatpush.msra.mxu0 %v32_v1  ;;  %120 = vmatpush.msra.mxu2 %v32_v1  ;;  %v41_v9 = vld [vmem:[%s265_s1 + $0xb8] sm:$0xff]  ;;  %v40_v11 = vld [vmem:[%s265_s1 + $0xb0] sm:$0xff]  ;;  %v27_v12 = vld [vmem:[%s265_s1 + $0x48] sm:$0xff] }
   0x5   :  { %93 = vmatpush.msra.mxu1 %v43_v5  ;;  %v45_v13 = vld [vmem:[%s266_s2] sm:$0xff]  ;;  %v39_v14 = vld [vmem:[%s265_s1 + $0xa8] sm:$0xff]  ;;  %v25_v17 = vld [vmem:[%s265_s1 + $0x38] sm:$0xff] }
   0x6   :  { %66 = vmatpush.msra.mxu0 %v31_v3  ;;  %121 = vmatpush.msra.mxu2 %v31_v3  ;;  %v26_v15 = vld [vmem:[%s265_s1 + $0x40] sm:$0xff]  ;;  %v37_v18 = vld [vmem:[%s265_s1 + $0x98] sm:$0xff]  ;;  %v24_v19 = vld [vmem:[%s265_s1 + $0x30] sm:$0xff] }
   0x7   :  { %94 = vmatpush.msra.mxu1 %v42_v7  ;;  %49 = vperm.xlu0 %136, %v45_v13   ;;  %v38_v16 = vld [vmem:[%s265_s1 + $0xa0] sm:$0xff]  ;;  %v36_v20 = vld [vmem:[%s265_s1 + $0x90] sm:$0xff]  ;;  %v46_v21 = vld [vmem:[%s266_s2 + $0x8] sm:$0xff] }
   0x8   :  { %67 = vmatpush.msra.mxu0 %v30_v6  ;;  %122 = vmatpush.msra.mxu2 %v30_v6  ;;  %v23_v22 = vld [vmem:[%s265_s1 + $0x28] sm:$0xff]  ;;  %v22_v24 = vld [vmem:[%s265_s1 + $0x20] sm:$0xff]  ;;  %v21_v26 = vld [vmem:[%s265_s1 + $0x18] sm:$0xff] }
   0x9   :  { %95 = vmatpush.msra.mxu1 %v41_v9  ;;  %v35_v23 = vld [vmem:[%s265_s1 + $0x88] sm:$0xff]  ;;  %v34_v25 = vld [vmem:[%s265_s1 + $0x80] sm:$0xff]  ;;  %v20_v28 = vld [vmem:[%s265_s1 + $0x10] sm:$0xff] }
   0xa   :  { %68 = vmatpush.msra.mxu0 %v29_v8  ;;  %123 = vmatpush.msra.mxu2 %v29_v8  ;;  %v15_v27 = vld [vmem:[%s267_s0 + $0x8] sm:$0xff]  ;;  %v18_v30 = vld [vmem:[%s265_s1] sm:$0xff]  ;;  %v16_v32 = vld [vmem:[%s267_s0 + $0x10] sm:$0xff] }
   0xb   :  { %96 = vmatpush.msra.mxu1 %v40_v11  ;;  %v19_v29 = vld [vmem:[%s265_s1 + $0x8] sm:$0xff]  ;;  %v14_v31 = vld [vmem:[%s267_s0] sm:$0xff]  ;;  %v17_v33 = vld [vmem:[%s267_s0 + $0x18] sm:$0xff] }
   0xc   :  { %69 = vmatpush.msra.mxu0 %v28_v10  ;;  %124 = vmatpush.msra.mxu2 %v28_v10 }
   0xd   :  { %97 = vmatpush.msra.mxu1 %v39_v14 }
   0xe   :  { %70 = vmatpush.msra.mxu0 %v27_v12  ;;  %125 = vmatpush.msra.mxu2 %v27_v12 }
   0xf   :  { %98 = vmatpush.msra.mxu1 %v38_v16  ;;  %54 = vperm.xlu0 %136, %v46_v21  }
  0x10   :  { %71 = vmatpush.msra.mxu0 %v26_v15  ;;  %126 = vmatpush.msra.mxu2 %v26_v15 }
  0x11   :  { %99 = vmatpush.msra.mxu1 %v37_v18 }
  0x12   :  { %72 = vmatpush.msra.mxu0 %v25_v17  ;;  %127 = vmatpush.msra.mxu2 %v25_v17 }
  0x13   :  { %100 = vmatpush.msra.mxu1 %v36_v20 }
  0x14   :  { %73 = vmatpush.msra.mxu0 %v24_v19  ;;  %128 = vmatpush.msra.mxu2 %v24_v19 }
  0x15   :  { %101 = vmatpush.msra.mxu1 %v35_v23 }
  0x16   :  { %74 = vmatpush.msra.mxu0 %v23_v22  ;;  %129 = vmatpush.msra.mxu2 %v23_v22 }
  0x17   :  { %102 = vmatpush.msra.mxu1 %v34_v25 }
  0x18   :  { %75 = vmatpush.msra.mxu0 %v22_v24  ;;  %130 = vmatpush.msra.mxu2 %v22_v24 }
  0x19   :  { %117 = vmatmul.msk.f32.vlgmr.msra.gmra.mxu1 %vm57_vm0, %v15_v27 }
  0x1a   :  { %76 = vmatpush.msra.mxu0 %v21_v26  ;;  %131 = vmatpush.msra.mxu2 %v21_v26 }
  0x1c   :  { %77 = vmatpush.msra.mxu0 %v20_v28  ;;  %132 = vmatpush.msra.mxu2 %v20_v28 }
  0x1e   :  { %78 = vmatpush.msra.mxu0 %v19_v29  ;;  %133 = vmatpush.msra.mxu2 %v19_v29 }
  0x20   :  { %79 = vmatpush.msra.mxu0 %v18_v30  ;;  %134 = vmatpush.msra.mxu2 %v18_v30 }
  0x21   :  { %80 = vmatmul.f32.vlgmr.msra.gmra.mxu0 %v14_v31  ;;  %83 = vmatmul.f32.vlgmr.msra.gmra.mxu2 %v16_v32 }
  0x22   :  { %118 = vmatmul.msk.f32.gmra.mxu1 %vm57_vm0, %v17_v33 }
  0x79   :  { %v50_v34 = vpop.permute.xlu0 %49 }
  0x81   :  { %v55_v39 = vpop.permute.xlu0 %54 }
  0x96   :  { %v104_v35 = vpop.f32.mrf.mxu1 }
  0x9e   :  { %v81_v36 = vpop.f32.mrf.mxu0 }
  0x9f   :  { %v82_v37 = vadd.f32 %v81_v36, %v50_v34  ;;  %v107_v41 = vpop.f32.mrf.mxu1 }
  0xa1   :  { %v105_v38 = vadd.f32 %v104_v35, %v82_v37 }
  0xa3   :  { %111 = vst.msk [vmem:[%s268_s3] sm:$0xff] %vm110_vm1, %v105_v38 }
  0xa4   :  { %v84_v40 = vpop.f32.mrf.mxu2 }
  0xa5   :  { %v85_v42 = vadd.f32 %v84_v40, %v55_v39 }
  0xa7   :  { %v108_v43 = vadd.f32 %v107_v41, %v85_v42 }
  0xa9   :  { %112 = vst.msk [vmem:[%s268_s3 + $0x8] sm:$0xff] %vm110_vm1, %v108_v43 }

// kernel: lenet5_forward.5
= control target key start
LH: loop header
LB: loop body
LE: loop exit
PB: predicated region body
PF: predicated region fallthrough
CT: control target
= control target key end

     0   :  { %s607_s0 = inlined_call_operand.vmem [shape: f32[2,400], index: 0, kind: input, shape index: {}]   ;;  %s608_s1 = inlined_call_operand.vmem [shape: f32[400,128], index: 1, kind: input, shape index: {}]   ;;  %s609_s2 = inlined_call_operand.vmem [shape: f32[1,128], index: 2, kind: input, shape index: {}]   ;;  %s610_s3 = inlined_call_operand.vmem [shape: f32[128,128], index: 3, kind: input, shape index: {}]   ;;  %s611_s4 = inlined_call_operand.vmem [shape: f32[1,128], index: 4, kind: input, shape index: {}]   ;;  %s612_s5 = inlined_call_operand.vmem [shape: f32[128,10], index: 5, kind: input, shape index: {}]   ;;  %s613_s6 = inlined_call_operand.vmem [shape: f32[1,10], index: 6, kind: input, shape index: {}]   ;;  %s614_s7 = inlined_call_operand.hbm [shape: f32[2,10], index: 7, kind: output, shape index: {}]  }
   0x1   :  { %v75_v0 = vld [vmem:[%s608_s1 + $0x178] sm:$0xff]  ;;  %v74_v2 = vld [vmem:[%s608_s1 + $0x170] sm:$0xff]  ;;  %v73_v5 = vld [vmem:[%s608_s1 + $0x168] sm:$0xff] }
   0x2   :  { %v43_v1 = vld [vmem:[%s608_s1 + $0x78] sm:$0xff]  ;;  %134 = vmatpush.msra.mxu2 %v75_v0  ;;  %v42_v3 = vld [vmem:[%s608_s1 + $0x70] sm:$0xff]  ;;  %v41_v6 = vld [vmem:[%s608_s1 + $0x68] sm:$0xff] }
   0x3   :  { %94 = vmatpush.msra.mxu0 %v43_v1  ;;  %v59_v4 = vld [vmem:[%s608_s1 + $0xf8] sm:$0xff]  ;;  %v58_v7 = vld [vmem:[%s608_s1 + $0xf0] sm:$0xff]  ;;  %v57_v8 = vld [vmem:[%s608_s1 + $0xe8] sm:$0xff] }
   0x4   :  { %114 = vmatpush.msra.mxu1 %v59_v4  ;;  %135 = vmatpush.msra.mxu2 %v74_v2  ;;  %v72_v9 = vld [vmem:[%s608_s1 + $0x160] sm:$0xff]  ;;  %v71_v12 = vld [vmem:[%s608_s1 + $0x158] sm:$0xff]  ;;  %v70_v15 = vld [vmem:[%s608_s1 + $0x150] sm:$0xff] }
   0x5   :  { %95 = vmatpush.msra.mxu0 %v42_v3  ;;  %v40_v10 = vld [vmem:[%s608_s1 + $0x60] sm:$0xff]  ;;  %v39_v13 = vld [vmem:[%s608_s1 + $0x58] sm:$0xff]  ;;  %v38_v16 = vld [vmem:[%s608_s1 + $0x50] sm:$0xff] }
   0x6   :  { %115 = vmatpush.msra.mxu1 %v58_v7  ;;  %136 = vmatpush.msra.mxu2 %v73_v5  ;;  %v56_v11 = vld [vmem:[%s608_s1 + $0xe0] sm:$0xff]  ;;  %v55_v14 = vld [vmem:[%s608_s1 + $0xd8] sm:$0xff]  ;;  %v54_v17 = vld [vmem:[%s608_s1 + $0xd0] sm:$0xff] }
   0x7   :  { %96 = vmatpush.msra.mxu0 %v41_v6  ;;  %v69_v18 = vld [vmem:[%s608_s1 + $0x148] sm:$0xff]  ;;  %v68_v21 = vld [vmem:[%s608_s1 + $0x140] sm:$0xff]  ;;  %v67_v24 = vld [vmem:[%s608_s1 + $0x138] sm:$0xff] }
   0x8   :  { %116 = vmatpush.msra.mxu1 %v57_v8  ;;  %137 = vmatpush.msra.mxu2 %v72_v9  ;;  %v37_v19 = vld [vmem:[%s608_s1 + $0x48] sm:$0xff]  ;;  %v36_v22 = vld [vmem:[%s608_s1 + $0x40] sm:$0xff]  ;;  %v35_v25 = vld [vmem:[%s608_s1 + $0x38] sm:$0xff] }
   0x9   :  { %97 = vmatpush.msra.mxu0 %v40_v10  ;;  %v53_v20 = vld [vmem:[%s608_s1 + $0xc8] sm:$0xff]  ;;  %v52_v23 = vld [vmem:[%s608_s1 + $0xc0] sm:$0xff]  ;;  %v51_v26 = vld [vmem:[%s608_s1 + $0xb8] sm:$0xff] }
   0xa   :  { %117 = vmatpush.msra.mxu1 %v56_v11  ;;  %138 = vmatpush.msra.mxu2 %v71_v12  ;;  %v77_v27 = vld [vmem:[%s608_s1 + $0x188] sm:$0xff]  ;;  %v27_v28 = vld [vmem:[%s607_s0] sm:$0xff]  ;;  %v66_v29 = vld [vmem:[%s608_s1 + $0x130] sm:$0xff] }
   0xb   :  { %98 = vmatpush.msra.mxu0 %v39_v13  ;;  %v34_v30 = vld [vmem:[%s608_s1 + $0x30] sm:$0xff]  ;;  %168 = vmatpush.msra.mxu3 %v77_v27  ;;  %83 = vst [vmem:[#allocation1] ss:$4 sm:$0xff] %v27_v28  ;;  %v76_v31 = vld [vmem:[%s608_s1 + $0x180] sm:$0xff]  ;;  %v190_v33 = vld [vmem:[%s610_s3 + $0x78] sm:$0xff] }
   0xc   :  { %118 = vmatpush.msra.mxu1 %v55_v14  ;;  %139 = vmatpush.msra.mxu2 %v70_v15  ;;  %v50_v32 = vld [vmem:[%s608_s1 + $0xb0] sm:$0xff]  ;;  %v65_v34 = vld [vmem:[%s608_s1 + $0x128] sm:$0xff]  ;;  %v64_v36 = vld [vmem:[%s608_s1 + $0x120] sm:$0xff] }
   0xd   :  { %99 = vmatpush.msra.mxu0 %v38_v16  ;;  %v33_v35 = vld [vmem:[%s608_s1 + $0x28] sm:$0xff]  ;;  %169 = vmatpush.msra.mxu3 %v76_v31  ;;  %v32_v37 = vld [vmem:[%s608_s1 + $0x20] sm:$0xff]  ;;  %v189_v39 = vld [vmem:[%s610_s3 + $0x70] sm:$0xff] }
   0xe   :  { %119 = vmatpush.msra.mxu1 %v54_v17  ;;  %140 = vmatpush.msra.mxu2 %v69_v18  ;;  %v49_v38 = vld [vmem:[%s608_s1 + $0xa8] sm:$0xff]  ;;  %v48_v40 = vld [vmem:[%s608_s1 + $0xa0] sm:$0xff] }
   0xf   :  { %100 = vmatpush.msra.mxu0 %v37_v19  ;;  %195 = vmatpush.msrb.mxu3 %v190_v33  ;;  %v188_v41 = vld [vmem:[%s610_s3 + $0x68] sm:$0xff] }
  0x10   :  { %120 = vmatpush.msra.mxu1 %v53_v20  ;;  %141 = vmatpush.msra.mxu2 %v68_v21 }
  0x11   :  { %101 = vmatpush.msra.mxu0 %v36_v22 }
  0x12   :  { %121 = vmatpush.msra.mxu1 %v52_v23  ;;  %142 = vmatpush.msra.mxu2 %v67_v24 }
  0x13   :  { %102 = vmatpush.msra.mxu0 %v35_v25 }
  0x14   :  { %122 = vmatpush.msra.mxu1 %v51_v26  ;;  %143 = vmatpush.msra.mxu2 %v66_v29 }
  0x15   :  { %103 = vmatpush.msra.mxu0 %v34_v30 }
  0x16   :  { %123 = vmatpush.msra.mxu1 %v50_v32  ;;  %144 = vmatpush.msra.mxu2 %v65_v34 }
  0x17   :  { %104 = vmatpush.msra.mxu0 %v33_v35 }
  0x18   :  { %12 = vsyncpa [#allocation3], 0  ;;  %124 = vmatpush.msra.mxu1 %v49_v38  ;;  %v63_v42 = vld [vmem:[%s608_s1 + $0x118] sm:$0xff]  ;;  %196 = vmatpush.msrb.mxu3 %v189_v39  ;;  %vm91_vm0 = vcmask 130048   ;;  %v62_v45 = vld [vmem:[%s608_s1 + $0x110] sm:$0xff]  ;;  %s305_s24 = smov [#allocation2]  }
  0x19   :  { %v31_v43 = vld [vmem:[%s608_s1 + $0x18] sm:$0xff]  ;;  %145 = vmatpush.msra.mxu2 %v64_v36  ;;  %105 = vmatpush.msra.mxu0 %v32_v37  ;;  %v30_v46 = vld [vmem:[%s608_s1 + $0x10] sm:$0xff]  ;;  %v187_v49 = vld [vmem:[%s610_s3 + $0x60] sm:$0xff]  ;;  %s263_s25 = sshll.u32 %s305_s24, 4  ;;  %s265_s28 = sshll.u32 %s614_s7, 4  ;;  %vm256_vm1 = vcmask 74752   ;;  %s264_s25 = int_to_ptr.vmem [resolvable:$true] %s263_s25  ;;  %s266_s28 = int_to_ptr.hbm [resolvable:$true] %s265_s28 }
  0x1a   :  { %v47_v44 = vld [vmem:[%s608_s1 + $0x98] sm:$0xff]  ;;  %125 = vmatpush.msra.mxu1 %v48_v40  ;;  %197 = vmatpush.msrb.mxu3 %v188_v41  ;;  %v46_v48 = vld [vmem:[%s608_s1 + $0x90] sm:$0xff]  ;;  %v61_v50 = vld [vmem:[%s608_s1 + $0x108] sm:$0xff] }
  0x1b   :  { %v87_v47 = vld.sshfl [vmem:[#allocation1 + $0x18] sm:$0xff pattern:$0x73625140]  ;;  %146 = vmatpush.msra.mxu2 %v63_v42  ;;  %106 = vmatpush.msra.mxu0 %v31_v43  ;;  %v29_v51 = vld [vmem:[%s608_s1 + $0x8] sm:$0xff]  ;;  %v60_v54 = vld [vmem:[%s608_s1 + $0x100] sm:$0xff] }
  0x1c   :  { %126 = vmatpush.msra.mxu1 %v47_v44  ;;  %274 = vmatmul.msk.f32.vlgmr.msra.gmra.mxu3 %vm91_vm0, %v87_v47  ;;  %v45_v52 = vld [vmem:[%s608_s1 + $0x88] sm:$0xff]  ;;  %v186_v53 = vld [vmem:[%s610_s3 + $0x58] sm:$0xff]  ;;  %v28_v55 = vld [vmem:[%s608_s1] sm:$0xff] }
  0x1d   :  { %147 = vmatpush.msra.mxu2 %v62_v45  ;;  %107 = vmatpush.msra.mxu0 %v30_v46  ;;  %v86_v56 = vld.sshfl [vmem:[#allocation1 + $0x10] sm:$0xff pattern:$0x73625140]  ;;  %v84_v57 = vld.sshfl [vmem:[#allocation1] sm:$0xff pattern:$0x73625140] }
  0x1e   :  { %127 = vmatpush.msra.mxu1 %v46_v48  ;;  %198 = vmatpush.msrb.mxu3 %v187_v49  ;;  %v44_v58 = vld [vmem:[%s608_s1 + $0x80] sm:$0xff]  ;;  %v185_v59 = vld [vmem:[%s610_s3 + $0x50] sm:$0xff]  ;;  %v85_v60 = vld.sshfl [vmem:[#allocation1 + $0x8] sm:$0xff pattern:$0x73625140] }
  0x1f   :  { %148 = vmatpush.msra.mxu2 %v61_v50  ;;  %108 = vmatpush.msra.mxu0 %v29_v51  ;;  %v184_v61 = vld [vmem:[%s610_s3 + $0x48] sm:$0xff]  ;;  %v183_v62 = vld [vmem:[%s610_s3 + $0x40] sm:$0xff]  ;;  %v182_v63 = vld [vmem:[%s610_s3 + $0x38] sm:$0xff] }
  0x20   :  { %128 = vmatpush.msra.mxu1 %v45_v52  ;;  %199 = vmatpush.msrb.mxu3 %v186_v53  ;;  %v181_v0 = vld [vmem:[%s610_s3 + $0x30] sm:$0xff]  ;;  %v180_v1 = vld [vmem:[%s610_s3 + $0x28] sm:$0xff]  ;;  %v179_v2 = vld [vmem:[%s610_s3 + $0x20] sm:$0xff] }
  0x21   :  { %149 = vmatpush.msra.mxu2 %v60_v54  ;;  %109 = vmatpush.msra.mxu0 %v28_v55  ;;  %v178_v3 = vld [vmem:[%s610_s3 + $0x18] sm:$0xff]  ;;  %v177_v4 = vld [vmem:[%s610_s3 + $0x10] sm:$0xff]  ;;  %v176_v5 = vld [vmem:[%s610_s3 + $0x8] sm:$0xff] }
  0x22   :  { %150 = vmatmul.f32.vlgmr.msra.gmra.mxu2 %v86_v56  ;;  %110 = vmatmul.f32.vlgmr.msra.gmra.mxu0 %v84_v57  ;;  %v175_v6 = vld [vmem:[%s610_s3] sm:$0xff]  ;;  %v231_v7 = vld [vmem:[%s612_s5 + $0x78] sm:$0xff]  ;;  %v230_v8 = vld [vmem:[%s612_s5 + $0x70] sm:$0xff] }
  0x23   :  { %129 = vmatpush.msra.mxu1 %v44_v58  ;;  %200 = vmatpush.msrb.mxu3 %v185_v59  ;;  %v229_v9 = vld [vmem:[%s612_s5 + $0x68] sm:$0xff]  ;;  %v228_v10 = vld [vmem:[%s612_s5 + $0x60] sm:$0xff]  ;;  %v227_v11 = vld [vmem:[%s612_s5 + $0x58] sm:$0xff] }
  0x24   :  { %130 = vmatmul.f32.vlgmr.msra.gmra.mxu1 %v85_v60  ;;  %236 = vmatpush.msrb.mxu0 %v231_v7  ;;  %v226_v12 = vld [vmem:[%s612_s5 + $0x50] sm:$0xff]  ;;  %v225_v13 = vld [vmem:[%s612_s5 + $0x48] sm:$0xff]  ;;  %v224_v14 = vld [vmem:[%s612_s5 + $0x40] sm:$0xff] }
  0x25   :  { %201 = vmatpush.msrb.mxu3 %v184_v61  ;;  %v223_v15 = vld [vmem:[%s612_s5 + $0x38] sm:$0xff]  ;;  %v276_v16 = vld [vmem:[%s609_s2] ss:$0 sm:$0xff]  ;;  %v222_v17 = vld [vmem:[%s612_s5 + $0x30] sm:$0xff] }
  0x26   :  { %237 = vmatpush.msrb.mxu0 %v230_v8  ;;  %v221_v18 = vld [vmem:[%s612_s5 + $0x28] sm:$0xff]  ;;  %v220_v21 = vld [vmem:[%s612_s5 + $0x20] sm:$0xff]  ;;  %v219_v24 = vld [vmem:[%s612_s5 + $0x18] sm:$0xff] }
  0x27   :  { %202 = vmatpush.msrb.mxu3 %v183_v62  ;;  %v218_v30 = vld [vmem:[%s612_s5 + $0x10] sm:$0xff]  ;;  %v217_v31 = vld [vmem:[%s612_s5 + $0x8] sm:$0xff]  ;;  %v216_v32 = vld [vmem:[%s612_s5] sm:$0xff] }
  0x28   :  { %238 = vmatpush.msrb.mxu0 %v229_v9  ;;  %v277_v33 = vld [vmem:[%s611_s4] ss:$0 sm:$0xff] }
  0x29   :  { %203 = vmatpush.msrb.mxu3 %v182_v63  ;;  %v278_v37 = vld [vmem:[%s613_s6] ss:$0 sm:$0xff] }
  0x2a   :  { %239 = vmatpush.msrb.mxu0 %v228_v10 }
  0x2b   :  { %204 = vmatpush.msrb.mxu3 %v181_v0 }
  0x2c   :  { %240 = vmatpush.msrb.mxu0 %v227_v11 }
  0x2d   :  { %205 = vmatpush.msrb.mxu3 %v180_v1 }
  0x2e   :  { %241 = vmatpush.msrb.mxu0 %v226_v12 }
  0x2f   :  { %206 = vmatpush.msrb.mxu3 %v179_v2 }
  0x30   :  { %242 = vmatpush.msrb.mxu0 %v225_v13 }
  0x31   :  { %207 = vmatpush.msrb.mxu3 %v178_v3 }
  0x32   :  { %243 = vmatpush.msrb.mxu0 %v224_v14 }
  0x33   :  { %208 = vmatpush.msrb.mxu3 %v177_v4 }
  0x34   :  { %244 = vmatpush.msrb.mxu0 %v223_v15 }
  0x35   :  { %209 = vmatpush.msrb.mxu3 %v176_v5 }
  0x36   :  { %245 = vmatpush.msrb.mxu0 %v222_v17 }
  0x37   :  { %210 = vmatpush.msrb.mxu3 %v175_v6 }
  0x38   :  { %246 = vmatpush.msrb.mxu0 %v221_v18 }
  0x3a   :  { %247 = vmatpush.msrb.mxu0 %v220_v21 }
  0x3c   :  { %248 = vmatpush.msrb.mxu0 %v219_v24 }
  0x3e   :  { %249 = vmatpush.msrb.mxu0 %v218_v30 }
  0x40   :  { %250 = vmatpush.msrb.mxu0 %v217_v31 }
  0x42   :  { %251 = vmatpush.msrb.mxu0 %v216_v32 }
  0x9f   :  { %v111_v19 = vpop.f32.mrf.mxu0  ;;  %v171_v26 = vpop.f32.mrf.mxu3 }
  0xa0   :  { %v112_v20 = vadd.f32 %v276_v16, %v111_v19 }
  0xa1   :  { %v131_v22 = vpop.f32.mrf.mxu1 }
  0xa2   :  { %v132_v23 = vadd.f32 %v131_v22, %v112_v20 }
  0xa5   :  { %v151_v25 = vpop.f32.mrf.mxu2 }
  0xa6   :  { %v152_v27 = vadd.f32 %v151_v25, %v132_v23 }
  0xa8   :  { %v172_v28 = vadd.f32 %v171_v26, %v152_v27 }
  0xaa   :  { %v174_v29 = vmax.f32 %v172_v28, 0.0 }
  0xac   :  { %211 = vmatmul.f32.vlgmr.msrb.gmra.mxu3 %v174_v29 }
 0x12f   :  { %v212_v34 = vpop.f32.mrf.mxu3 }
 0x130   :  { %v213_v35 = vadd.f32 %v277_v33, %v212_v34 }
 0x132   :  { %v215_v36 = vmax.f32 %v213_v35, 0.0 }
 0x134   :  { %252 = vmatmul.f32.vlgmr.msrb.gmra.mxu0 %v215_v36 }
 0x1b1   :  { %v253_v38 = vpop.f32.mrf.mxu0 }
 0x1b2   :  { %v254_v39 = vadd.f32 %v278_v37, %v253_v38 }
 0x1b4   :  { %257 = vst.msk [vmem:[#allocation2] sm:$0x3] %vm256_vm1, %v254_v39 }
 0x1b5   :  { %268 = dma.vmem_to_hbm [thread:$0]  %s264_s25, 32, %s266_s28, [#allocation3]  }
 0x1b6   :  { %303 = dma.done.wait [#allocation3], 32  }
 0x1b7   :  { %304 = vsyncadd [#allocation3], 4294967264 }
 0x1b8   :  { %273 = vsyncpa [#allocation3], 1 }

</bundles_post_ra>
